<compile_context>
chip_gen: v5e
topology: v5e:2x2
jax: 0.10.0
libtpu: 0.0.40
codegen_flags: <defaults>
</compile_context>

<pallas_src>
import jax
import jax.numpy as jnp
from jax.experimental import pallas as pl
from jax.experimental.pallas import tpu as pltpu

H1 = 500
H2 = 100
LANE = 128


def _round_up(n, m):
    return (n + m - 1) // m * m


def _pad_to(a, shape):
    pads = [(0, t - s) for s, t in zip(a.shape, shape)]
    return jnp.pad(a, pads) if any(p[1] for p in pads) else a


def _encoder_kernel(x_ref, w1_ref, b1_ref, w2_ref, b2_ref, w3_ref, b3_ref, out_ref):
    # bf16 operands on the MXU, f32 accumulation / bias / ReLU on the VPU.
    x = x_ref[...]
    h1 = jnp.dot(x, w1_ref[...], preferred_element_type=jnp.float32) + b1_ref[...]
    h1 = jnp.maximum(h1, 0.0).astype(x_ref.dtype)          # back to bf16 for next matmul
    h2 = jnp.dot(h1, w2_ref[...], preferred_element_type=jnp.float32) + b2_ref[...]
    h2 = jnp.maximum(h2, 0.0).astype(x_ref.dtype)
    h3 = jnp.dot(h2, w3_ref[...], preferred_element_type=jnp.float32) + b3_ref[...]
    out_ref[...] = jnp.maximum(h3, 0.0).astype(out_ref.dtype)


def encoder_forward(x, params, *, tb=256):
    """x: (B, input_dim) float32. params: pre-transposed f32 weights/biases."""
    B, input_dim = x.shape
    emb_dim = params["w3"].shape[1]

    # Lane-aligned padded feature widths -> unmasked stores, clean MXU tiles.
    Dp = _round_up(input_dim, LANE)
    H1p = _round_up(H1, LANE)          # 500 -> 512
    H2p = _round_up(H2, LANE)          # 100 -> 128
    Ep = _round_up(emb_dim, LANE)

    # Batch tile: keep it MXU-sized (default 256) but aim for >=2 grid steps so
    # v7x's two TensorCores both get work; tiny batches fall back to one tile.
    if B <= tb:
        tb = _round_up(max(-(-B // 2), 8), 8) if B > 8 else _round_up(B, 8)
    n_steps = -(-B // tb)              # cdiv — no divisibility requirement on B
    Bp = n_steps * tb

    cdt = jnp.bfloat16                 # MXU operand dtype (halves HBM traffic)
    xp = _pad_to(x, (Bp, Dp)).astype(cdt)
    w1 = _pad_to(params["w1"], (Dp, H1p)).astype(cdt)
    w2 = _pad_to(params["w2"], (H1p, H2p)).astype(cdt)
    w3 = _pad_to(params["w3"], (H2p, Ep)).astype(cdt)
    b1 = _pad_to(params["b1"], (1, H1p)).astype(jnp.float32)
    b2 = _pad_to(params["b2"], (1, H2p)).astype(jnp.float32)
    b3 = _pad_to(params["b3"], (1, Ep)).astype(jnp.float32)

    # TODO(synk): mark the constant weight/bias blocks pipeline_mode=pl.Buffered(1)
    #             (or DMA them once to VMEM scratch) once verified on the target
    #             jax version; they are ~0.6 MiB bf16 so double-buffering is cheap.
    # TODO(synk): for production input_dim in the thousands, add a K-tiling grid
    #             axis ("arbitrary") with an f32 VMEM accumulator for layer 1 and
    #             raise vmem_limit_bytes on v5e if tb is pushed past ~1024.
    in_specs = [
        pl.BlockSpec((tb, Dp), lambda i: (i, 0)),      # x tile (batch-parallel)
        pl.BlockSpec((Dp, H1p), lambda i: (0, 0)),     # w1 (constant block)
        pl.BlockSpec((1, H1p), lambda i: (0, 0)),      # b1
        pl.BlockSpec((H1p, H2p), lambda i: (0, 0)),    # w2
        pl.BlockSpec((1, H2p), lambda i: (0, 0)),      # b2
        pl.BlockSpec((H2p, Ep), lambda i: (0, 0)),     # w3
        pl.BlockSpec((1, Ep), lambda i: (0, 0)),       # b3
    ]
    out_spec = pl.BlockSpec((tb, Ep), lambda i: (i, 0))

    out = pl.pallas_call(
        _encoder_kernel,
        out_shape=jax.ShapeDtypeStruct((Bp, Ep), jnp.float32),
        grid_spec=pltpu.PrefetchScalarGridSpec(
            num_scalar_prefetch=0,
            grid=(n_steps,),
            in_specs=in_specs,
            out_specs=out_spec,
        ),
        compiler_params=pltpu.CompilerParams(
            dimension_semantics=("parallel",),
        ),
    )(xp, w1, b1, w2, b2, w3, b3)

    return out[:B, :emb_dim]


def init_encoder_params(key, input_dim, embedding_dim):
    """Deterministic init mimicking nn.Linear (U(-1/sqrt(in), 1/sqrt(in))).
    Weights stored transposed: (in_features, out_features); biases (1, out)."""
    dims = [(input_dim, H1), (H1, H2), (H2, embedding_dim)]
    params = {}
    for idx, (fan_in, fan_out) in enumerate(dims, start=1):
        key, kw, kb = jax.random.split(key, 3)
        bound = 1.0 / jnp.sqrt(jnp.float32(fan_in))
        params[f"w{idx}"] = jax.random.uniform(
            kw, (fan_in, fan_out), jnp.float32, minval=-bound, maxval=bound
        )
        params[f"b{idx}"] = jax.random.uniform(
            kb, (1, fan_out), jnp.float32, minval=-bound, maxval=bound
        )
    return params


def encoder_reference(x, params):
    """Pure-JAX reference on the same bf16-operand / f32-accumulate path as the kernel."""
    cdt = jnp.bfloat16
    h = x.astype(cdt)
    for idx in (1, 2, 3):
        h = jnp.dot(h, params[f"w{idx}"].astype(cdt), preferred_element_type=jnp.float32)
        h = jnp.maximum(h + params[f"b{idx}"], 0.0)
        if idx < 3:
            h = h.astype(cdt)
    return h


if __name__ == "__main__":
    key = jax.random.PRNGKey(0)
    batch, input_dim, embedding_dim = 8, 32, 16

    key, kx = jax.random.split(key)
    x = jax.random.normal(kx, (batch, input_dim), dtype=jnp.float32)
    params = init_encoder_params(key, input_dim, embedding_dim)

    out = encoder_forward(x, params)
    out = jax.block_until_ready(out)

    ref = encoder_reference(x, params)
    assert out.shape == (batch, embedding_dim)
    max_err = jnp.max(jnp.abs(out - ref))
    assert jnp.allclose(out, ref, atol=2e-3, rtol=2e-3), f"mismatch vs reference (max abs err {max_err})"

    print("KERNEL_OK")
</pallas_src>

<mosaic_0001>
module attributes {stable_mosaic.version = 11 : i64} {
  func.func @_encoder_kernel(%arg0: i32, %arg1: memref<8x128xbf16, #tpu.memory_space<vmem>>, %arg2: memref<128x512xbf16, #tpu.memory_space<vmem>>, %arg3: memref<1x512xf32, #tpu.memory_space<vmem>>, %arg4: memref<512x128xbf16, #tpu.memory_space<vmem>>, %arg5: memref<1x128xf32, #tpu.memory_space<vmem>>, %arg6: memref<128x128xbf16, #tpu.memory_space<vmem>>, %arg7: memref<1x128xf32, #tpu.memory_space<vmem>>, %arg8: memref<8x128xf32, #tpu.memory_space<vmem>>) attributes {dimension_semantics = [#tpu.dimension_semantics<parallel>], iteration_bounds = array<i64: 1>, scalar_prefetch = 0 : i64, scratch_operands = 0 : i64, tpu.core_type = #tpu.core_type<tc>, window_params = [{transform_indices = @transform_0, window_bounds = array<i64: 8, 128>}, {pipeline_mode = #tpu.pipeline_mode<synchronous>, transform_indices = @transform_1, window_bounds = array<i64: 128, 512>}, {pipeline_mode = #tpu.pipeline_mode<synchronous>, transform_indices = @transform_2, window_bounds = array<i64: 1, 512>}, {pipeline_mode = #tpu.pipeline_mode<synchronous>, transform_indices = @transform_3, window_bounds = array<i64: 512, 128>}, {pipeline_mode = #tpu.pipeline_mode<synchronous>, transform_indices = @transform_4, window_bounds = array<i64: 1, 128>}, {pipeline_mode = #tpu.pipeline_mode<synchronous>, transform_indices = @transform_5, window_bounds = array<i64: 128, 128>}, {pipeline_mode = #tpu.pipeline_mode<synchronous>, transform_indices = @transform_6, window_bounds = array<i64: 1, 128>}, {transform_indices = @transform_7, window_bounds = array<i64: 8, 128>}]} {
    %c0 = arith.constant 0 : index
    %c0_0 = arith.constant 0 : index
    %0 = vector.load %arg1[%c0, %c0_0] : memref<8x128xbf16, #tpu.memory_space<vmem>>, vector<8x128xbf16>
    %c0_1 = arith.constant 0 : index
    %c0_2 = arith.constant 0 : index
    %1 = vector.load %arg2[%c0_1, %c0_2] : memref<128x512xbf16, #tpu.memory_space<vmem>>, vector<128x512xbf16>
    %cst = arith.constant dense<0.000000e+00> : vector<8x512xf32>
    %2 = tpu.matmul %0, %1, %cst {dimension_numbers = #tpu.dot_dimension_numbers<[1], [0], [0], [1], [0, 0, 1, 1], [], []>} : vector<8x128xbf16>, vector<128x512xbf16>, vector<8x512xf32> -> vector<8x512xf32>
    %c0_3 = arith.constant 0 : index
    %c0_4 = arith.constant 0 : index
    %3 = vector.load %arg3[%c0_3, %c0_4] : memref<1x512xf32, #tpu.memory_space<vmem>>, vector<1x512xf32>
    %4 = vector.broadcast %3 : vector<1x512xf32> to vector<8x512xf32>
    %5 = arith.addf %2, %4 : vector<8x512xf32>
    %cst_5 = arith.constant 0.000000e+00 : f32
    %6 = vector.broadcast %cst_5 : f32 to vector<8x512xf32>
    %7 = arith.maximumf %5, %6 : vector<8x512xf32>
    %8 = arith.truncf %7 : vector<8x512xf32> to vector<8x512xbf16>
    %c0_6 = arith.constant 0 : index
    %c0_7 = arith.constant 0 : index
    %9 = vector.load %arg4[%c0_6, %c0_7] : memref<512x128xbf16, #tpu.memory_space<vmem>>, vector<512x128xbf16>
    %cst_8 = arith.constant dense<0.000000e+00> : vector<8x128xf32>
    %10 = tpu.matmul %8, %9, %cst_8 {dimension_numbers = #tpu.dot_dimension_numbers<[1], [0], [0], [1], [0, 0, 1, 1], [], []>} : vector<8x512xbf16>, vector<512x128xbf16>, vector<8x128xf32> -> vector<8x128xf32>
    %c0_9 = arith.constant 0 : index
    %c0_10 = arith.constant 0 : index
    %11 = vector.load %arg5[%c0_9, %c0_10] : memref<1x128xf32, #tpu.memory_space<vmem>>, vector<1x128xf32>
    %12 = vector.broadcast %11 : vector<1x128xf32> to vector<8x128xf32>
    %13 = arith.addf %10, %12 : vector<8x128xf32>
    %cst_11 = arith.constant 0.000000e+00 : f32
    %14 = vector.broadcast %cst_11 : f32 to vector<8x128xf32>
    %15 = arith.maximumf %13, %14 : vector<8x128xf32>
    %16 = arith.truncf %15 : vector<8x128xf32> to vector<8x128xbf16>
    %c0_12 = arith.constant 0 : index
    %c0_13 = arith.constant 0 : index
    %17 = vector.load %arg6[%c0_12, %c0_13] : memref<128x128xbf16, #tpu.memory_space<vmem>>, vector<128x128xbf16>
    %cst_14 = arith.constant dense<0.000000e+00> : vector<8x128xf32>
    %18 = tpu.matmul %16, %17, %cst_14 {dimension_numbers = #tpu.dot_dimension_numbers<[1], [0], [0], [1], [0, 0, 1, 1], [], []>} : vector<8x128xbf16>, vector<128x128xbf16>, vector<8x128xf32> -> vector<8x128xf32>
    %c0_15 = arith.constant 0 : index
    %c0_16 = arith.constant 0 : index
    %19 = vector.load %arg7[%c0_15, %c0_16] : memref<1x128xf32, #tpu.memory_space<vmem>>, vector<1x128xf32>
    %20 = vector.broadcast %19 : vector<1x128xf32> to vector<8x128xf32>
    %21 = arith.addf %18, %20 : vector<8x128xf32>
    %cst_17 = arith.constant 0.000000e+00 : f32
    %22 = vector.broadcast %cst_17 : f32 to vector<8x128xf32>
    %23 = arith.maximumf %21, %22 : vector<8x128xf32>
    %c0_18 = arith.constant 0 : index
    %c0_19 = arith.constant 0 : index
    %24 = vector.load %arg8[%c0_18, %c0_19] : memref<8x128xf32, #tpu.memory_space<vmem>>, vector<8x128xf32>
    tpu.vector_store %arg8[%c0_18, %c0_19], %23 {strides = array<i32>} : memref<8x128xf32, #tpu.memory_space<vmem>>, vector<8x128xf32>,
    return
  }
  func.func @transform_0(%arg0: i32) -> (i32, i32) {
    %c0_i32 = arith.constant 0 : i32
    %c0_i32_0 = arith.constant 0 : i32
    return %arg0, %c0_i32 : i32, i32
  }
  func.func @transform_1(%arg0: i32) -> (i32, i32) {
    %c0_i32 = arith.constant 0 : i32
    %c0_i32_0 = arith.constant 0 : i32
    %c0_i32_1 = arith.constant 0 : i32
    return %c0_i32, %c0_i32_0 : i32, i32
  }
  func.func @transform_2(%arg0: i32) -> (i32, i32) {
    %c0_i32 = arith.constant 0 : i32
    %c0_i32_0 = arith.constant 0 : i32
    %c0_i32_1 = arith.constant 0 : i32
    return %c0_i32, %c0_i32_0 : i32, i32
  }
  func.func @transform_3(%arg0: i32) -> (i32, i32) {
    %c0_i32 = arith.constant 0 : i32
    %c0_i32_0 = arith.constant 0 : i32
    %c0_i32_1 = arith.constant 0 : i32
    return %c0_i32, %c0_i32_0 : i32, i32
  }
  func.func @transform_4(%arg0: i32) -> (i32, i32) {
    %c0_i32 = arith.constant 0 : i32
    %c0_i32_0 = arith.constant 0 : i32
    %c0_i32_1 = arith.constant 0 : i32
    return %c0_i32, %c0_i32_0 : i32, i32
  }
  func.func @transform_5(%arg0: i32) -> (i32, i32) {
    %c0_i32 = arith.constant 0 : i32
    %c0_i32_0 = arith.constant 0 : i32
    %c0_i32_1 = arith.constant 0 : i32
    return %c0_i32, %c0_i32_0 : i32, i32
  }
  func.func @transform_6(%arg0: i32) -> (i32, i32) {
    %c0_i32 = arith.constant 0 : i32
    %c0_i32_0 = arith.constant 0 : i32
    %c0_i32_1 = arith.constant 0 : i32
    return %c0_i32, %c0_i32_0 : i32, i32
  }
  func.func @transform_7(%arg0: i32) -> (i32, i32) {
    %c0_i32 = arith.constant 0 : i32
    %c0_i32_0 = arith.constant 0 : i32
    return %arg0, %c0_i32 : i32, i32
  }
}

</mosaic_0001>

<bundles_post_ra>
// kernel: tpu_custom_call.1
= control target key start
LH: loop header
LB: loop body
LE: loop exit
PB: predicated region body
PF: predicated region fallthrough
CT: control target
= control target key end

     0   :  { %12 = vsyncpa [#allocation3], 0  ;;  %s1378_s0 = inlined_call_operand.hbm [shape: bf16[8,128], index: 0, kind: input, shape index: {}]   ;;  %s1379_s1 = inlined_call_operand.hbm [shape: bf16[128,512], index: 1, kind: input, shape index: {}]   ;;  %s1380_s2 = inlined_call_operand.hbm [shape: f32[1,512], index: 2, kind: input, shape index: {}]   ;;  %s1381_s3 = inlined_call_operand.hbm [shape: bf16[512,128], index: 3, kind: input, shape index: {}]   ;;  %s1382_s4 = inlined_call_operand.vmem [shape: f32[1,128], index: 4, kind: input, shape index: {}]   ;;  %s1383_s5 = inlined_call_operand.hbm [shape: bf16[128,128], index: 5, kind: input, shape index: {}]   ;;  %s1384_s6 = inlined_call_operand.vmem [shape: f32[1,128], index: 6, kind: input, shape index: {}]   ;;  %s1385_s7 = inlined_call_operand.hbm [shape: f32[8,128], index: 7, kind: output, shape index: {}]  }
   0x1   :  { %13 = vsyncpa [#allocation6], 0 }
   0x2   :  { %14 = vsyncpa [#allocation9], 0  ;;  %s31_s26 = sshll.u32 %s1379_s1, 4  ;;  %s32_s26 = int_to_ptr.hbm [resolvable:$true] %s31_s26 }
   0x3   :  { %15 = vsyncpa [#allocation4], 0  ;;  %s1304_s27 = smov [#allocation5]   ;;  %s55_s8 = sshll.u32 %s1381_s3, 4  ;;  %s56_s8 = int_to_ptr.hbm [resolvable:$true] %s55_s8 }
   0x4   :  { %s33_s28 = sshll.u32 %s1304_s27, 4  ;;  %s1305_s9 = smov 256   ;;  %s34_s28 = int_to_ptr.vmem [resolvable:$true] %s33_s28 }
   0x5   :  { %s1306_s10 = smov 16   ;;  %s1307_s11 = smov [#allocation8]  }
   0x6   :  { %39 = dma.hbm_to_vmem [thread:$0]  %s32_s26, 4096, %s34_s28, [#allocation6], %s1305_s9, %s1305_s9, %s1306_s10  }
   0x7   :  { %s57_s12 = sshll.u32 %s1307_s11, 4  ;;  %s1308_s13 = smov 64   ;;  %s58_s12 = int_to_ptr.vmem [resolvable:$true] %s57_s12 }
   0x8   :  { %s1309_s14 = smov 4   ;;  %s21_s16 = sshll.u32 %s1378_s0, 4  ;;  %s22_s16 = int_to_ptr.hbm [resolvable:$true] %s21_s16 }
   0x9   :  { %63 = dma.hbm_to_vmem [thread:$0]  %s56_s8, 4096, %s58_s12, [#allocation9], %s1308_s13, %s1308_s13, %s1309_s14  }
   0xa   :  { %s1310_s17 = smov [#allocation2]   ;;  %s45_s20 = sshll.u32 %s1380_s2, 4  ;;  %s46_s20 = int_to_ptr.hbm [resolvable:$true] %s45_s20 }
   0xb   :  { %s23_s18 = sshll.u32 %s1310_s17, 4  ;;  %s1311_s21 = smov [#allocation7]   ;;  %s24_s18 = int_to_ptr.vmem [resolvable:$true] %s23_s18 }
   0xc   :  { %26 = dma.hbm_to_vmem [thread:$0]  %s22_s16, 64, %s24_s18, [#allocation3]  }
   0xd   :  { %s47_s22 = sshll.u32 %s1311_s21, 4  ;;  %s70_s25 = sshll.u32 %s1383_s5, 4  ;;  %s48_s22 = int_to_ptr.vmem [resolvable:$true] %s47_s22  ;;  %s71_s25 = int_to_ptr.hbm [resolvable:$true] %s70_s25 }
   0xe   :  { %50 = dma.hbm_to_vmem [thread:$0]  %s46_s20, 64, %s48_s22, [#allocation6]  }
   0xf   :  { %s1312_s0 = smov [#allocation10]  }
  0x10   :  { %s72_s26 = sshll.u32 %s1312_s0, 4  ;;  %s73_s26 = int_to_ptr.vmem [resolvable:$true] %s72_s26 }
  0x11   :  { %78 = dma.hbm_to_vmem [thread:$0]  %s71_s25, 1024, %s73_s26, [#allocation9], %s1308_s13, %s1308_s13, %s1309_s14  }
  0x12   :  { %1296 = dma.done.wait [#allocation3], 64  }
  0x13   :  { %1297 = vsyncadd [#allocation3], 4294967232 }
  0x14   :  { %1298 = dma.done.wait [#allocation6], 4160  }
  0x15   :  { %1299 = vsyncadd [#allocation6], 4294963136 }
  0x16   :  { %1300 = dma.done.wait [#allocation9], 5120  }
  0x17   :  { %1301 = vsyncadd [#allocation9], 4294962176  ;;  %v894_v0 = vld [vmem:[#allocation5 + $0xe0] sm:$0xf]  ;;  %v1098_v1 = vld [vmem:[#allocation5 + $0xec] sm:$0xf0] }
  0x18   :  { %v902_v2 = vld [vmem:[#allocation5 + $0xe8] sm:$0xf]  ;;  %v895_v3 = vor.u32 %v1098_v1, %v894_v0  ;;  %v1099_v4 = vld [vmem:[#allocation5 + $0xf4] sm:$0xf0]  ;;  %v1097_v5 = vld [vmem:[#allocation5 + $0xec] sm:$0xf] }
  0x19   :  { %v904_v6 = vld [vmem:[#allocation5 + $0xf8] sm:$0xf0]  ;;  %v903_v7 = vor.u32 %v1099_v4, %v902_v2  ;;  %v1096_v9 = vld [vmem:[#allocation5 + $0xe4] sm:$0xf]  ;;  %v896_v10 = vld [vmem:[#allocation5 + $0xf0] sm:$0xf0] }
  0x1a   :  { %v907_v8 = vor.u32 %v1097_v5, %v904_v6  ;;  %v878_v11 = vld [vmem:[#allocation5 + $0xc0] sm:$0xf]  ;;  %304 = vmatpush.bf16.msra.mxu0 %v895_v3  ;;  %v899_v12 = vor.u32 %v1096_v9, %v896_v10  ;;  %v1094_v13 = vld [vmem:[#allocation5 + $0xcc] sm:$0xf0]  ;;  %v886_v14 = vld [vmem:[#allocation5 + $0xc8] sm:$0xf] }
  0x1b   :  { %v1095_v15 = vld [vmem:[#allocation5 + $0xd4] sm:$0xf0]  ;;  %330 = vmatpush.bf16.msra.mxu2 %v903_v7  ;;  %v879_v16 = vor.u32 %v1094_v13, %v878_v11  ;;  %v1093_v18 = vld [vmem:[#allocation5 + $0xcc] sm:$0xf]  ;;  %v888_v19 = vld [vmem:[#allocation5 + $0xd8] sm:$0xf0] }
  0x1c   :  { %343 = vmatpush.bf16.msra.mxu3 %v907_v8  ;;  %v887_v17 = vor.u32 %v1095_v15, %v886_v14  ;;  %v1092_v20 = vld [vmem:[#allocation5 + $0xc4] sm:$0xf]  ;;  %317 = vmatpush.bf16.msra.mxu1 %v899_v12  ;;  %v891_v21 = vor.u32 %v1093_v18, %v888_v19  ;;  %v880_v22 = vld [vmem:[#allocation5 + $0xd0] sm:$0xf0]  ;;  %v862_v23 = vld [vmem:[#allocation5 + $0xa0] sm:$0xf] }
  0x1d   :  { %v1090_v24 = vld [vmem:[#allocation5 + $0xac] sm:$0xf0]  ;;  %v883_v25 = vor.u32 %v1092_v20, %v880_v22  ;;  %v870_v26 = vld [vmem:[#allocation5 + $0xa8] sm:$0xf]  ;;  %v1091_v27 = vld [vmem:[#allocation5 + $0xb4] sm:$0xf0] }
  0x1e   :  { %v1089_v28 = vld [vmem:[#allocation5 + $0xac] sm:$0xf]  ;;  %305 = vmatpush.bf16.msra.mxu0 %v879_v16  ;;  %v863_v29 = vor.u32 %v1090_v24, %v862_v23  ;;  %v872_v30 = vld [vmem:[#allocation5 + $0xb8] sm:$0xf0]  ;;  %v1088_v31 = vld [vmem:[#allocation5 + $0xa4] sm:$0xf]  ;;  %v871_v33 = vor.u32 %v1091_v27, %v870_v26 }
  0x1f   :  { %v864_v32 = vld [vmem:[#allocation5 + $0xb0] sm:$0xf0]  ;;  %331 = vmatpush.bf16.msra.mxu2 %v887_v17  ;;  %v875_v34 = vor.u32 %v1089_v28, %v872_v30  ;;  %v846_v35 = vld [vmem:[#allocation5 + $0x80] sm:$0xf]  ;;  %v1086_v36 = vld [vmem:[#allocation5 + $0x8c] sm:$0xf0] }
  0x20   :  { %344 = vmatpush.bf16.msra.mxu3 %v891_v21  ;;  %v854_v37 = vld [vmem:[#allocation5 + $0x88] sm:$0xf]  ;;  %318 = vmatpush.bf16.msra.mxu1 %v883_v25  ;;  %v867_v38 = vor.u32 %v1088_v31, %v864_v32  ;;  %v1087_v39 = vld [vmem:[#allocation5 + $0x94] sm:$0xf0]  ;;  %v1085_v40 = vld [vmem:[#allocation5 + $0x8c] sm:$0xf]  ;;  %v847_v44 = vor.u32 %v1086_v36, %v846_v35 }
  0x21   :  { %v856_v41 = vld [vmem:[#allocation5 + $0x98] sm:$0xf0]  ;;  %v1084_v42 = vld [vmem:[#allocation5 + $0x84] sm:$0xf]  ;;  %v848_v43 = vld [vmem:[#allocation5 + $0x90] sm:$0xf0]  ;;  %v855_v45 = vor.u32 %v1087_v39, %v854_v37 }
  0x22   :  { %306 = vmatpush.bf16.msra.mxu0 %v863_v29  ;;  %v859_v46 = vor.u32 %v1085_v40, %v856_v41  ;;  %v830_v47 = vld [vmem:[#allocation5 + $0x60] sm:$0xf]  ;;  %v1082_v48 = vld [vmem:[#allocation5 + $0x6c] sm:$0xf0]  ;;  %v838_v49 = vld [vmem:[#allocation5 + $0x68] sm:$0xf]  ;;  %v851_v50 = vor.u32 %v1084_v42, %v848_v43 }
  0x23   :  { %332 = vmatpush.bf16.msra.mxu2 %v871_v33  ;;  %v1083_v51 = vld [vmem:[#allocation5 + $0x74] sm:$0xf0]  ;;  %v1081_v52 = vld [vmem:[#allocation5 + $0x6c] sm:$0xf]  ;;  %v840_v53 = vld [vmem:[#allocation5 + $0x78] sm:$0xf0]  ;;  %v831_v56 = vor.u32 %v1082_v48, %v830_v47 }
  0x24   :  { %345 = vmatpush.bf16.msra.mxu3 %v875_v34  ;;  %319 = vmatpush.bf16.msra.mxu1 %v867_v38  ;;  %v1080_v54 = vld [vmem:[#allocation5 + $0x64] sm:$0xf]  ;;  %v832_v55 = vld [vmem:[#allocation5 + $0x70] sm:$0xf0]  ;;  %v839_v57 = vor.u32 %v1083_v51, %v838_v49  ;;  %v843_v58 = vor.u32 %v1081_v52, %v840_v53  ;;  %v814_v59 = vld [vmem:[#allocation5 + $0x40] sm:$0xf] }
  0x25   :  { %v1078_v60 = vld [vmem:[#allocation5 + $0x4c] sm:$0xf0]  ;;  %v822_v61 = vld [vmem:[#allocation5 + $0x48] sm:$0xf]  ;;  %v835_v62 = vor.u32 %v1080_v54, %v832_v55  ;;  %v1079_v63 = vld [vmem:[#allocation5 + $0x54] sm:$0xf0] }
  0x26   :  { %307 = vmatpush.bf16.msra.mxu0 %v847_v44  ;;  %v1077_v0 = vld [vmem:[#allocation5 + $0x4c] sm:$0xf]  ;;  %v824_v1 = vld [vmem:[#allocation5 + $0x58] sm:$0xf0]  ;;  %v1076_v2 = vld [vmem:[#allocation5 + $0x44] sm:$0xf]  ;;  %v815_v4 = vor.u32 %v1078_v60, %v814_v59  ;;  %v823_v5 = vor.u32 %v1079_v63, %v822_v61 }
  0x27   :  { %333 = vmatpush.bf16.msra.mxu2 %v855_v45  ;;  %v816_v3 = vld [vmem:[#allocation5 + $0x50] sm:$0xf0]  ;;  %v827_v6 = vor.u32 %v1077_v0, %v824_v1  ;;  %v798_v7 = vld [vmem:[#allocation5 + $0x20] sm:$0xf]  ;;  %v1074_v8 = vld [vmem:[#allocation5 + $0x2c] sm:$0xf0] }
  0x28   :  { %346 = vmatpush.bf16.msra.mxu3 %v859_v46  ;;  %320 = vmatpush.bf16.msra.mxu1 %v851_v50  ;;  %v806_v9 = vld [vmem:[#allocation5 + $0x28] sm:$0xf]  ;;  %v819_v10 = vor.u32 %v1076_v2, %v816_v3  ;;  %v1075_v11 = vld [vmem:[#allocation5 + $0x34] sm:$0xf0]  ;;  %v1073_v12 = vld [vmem:[#allocation5 + $0x2c] sm:$0xf]  ;;  %v799_v16 = vor.u32 %v1074_v8, %v798_v7 }
  0x29   :  { %v808_v13 = vld [vmem:[#allocation5 + $0x38] sm:$0xf0]  ;;  %v1072_v14 = vld [vmem:[#allocation5 + $0x24] sm:$0xf]  ;;  %v800_v15 = vld [vmem:[#allocation5 + $0x30] sm:$0xf0]  ;;  %v807_v17 = vor.u32 %v1075_v11, %v806_v9 }
  0x2a   :  { %308 = vmatpush.bf16.msra.mxu0 %v831_v56  ;;  %v811_v18 = vor.u32 %v1073_v12, %v808_v13  ;;  %v782_v19 = vld [vmem:[#allocation5] sm:$0xf]  ;;  %v1070_v20 = vld [vmem:[#allocation5 + $0xc] sm:$0xf0]  ;;  %v790_v21 = vld [vmem:[#allocation5 + $0x8] sm:$0xf]  ;;  %v803_v22 = vor.u32 %v1072_v14, %v800_v15 }
  0x2b   :  { %334 = vmatpush.bf16.msra.mxu2 %v839_v57  ;;  %v1071_v23 = vld [vmem:[#allocation5 + $0x14] sm:$0xf0]  ;;  %v1069_v24 = vld [vmem:[#allocation5 + $0xc] sm:$0xf]  ;;  %v792_v25 = vld [vmem:[#allocation5 + $0x18] sm:$0xf0]  ;;  %v783_v28 = vor.u32 %v1070_v20, %v782_v19 }
  0x2c   :  { %347 = vmatpush.bf16.msra.mxu3 %v843_v58  ;;  %321 = vmatpush.bf16.msra.mxu1 %v835_v62  ;;  %v1068_v26 = vld [vmem:[#allocation5 + $0x4] sm:$0xf]  ;;  %v784_v27 = vld [vmem:[#allocation5 + $0x10] sm:$0xf0]  ;;  %v791_v29 = vor.u32 %v1071_v23, %v790_v21  ;;  %v795_v30 = vor.u32 %v1069_v24, %v792_v25  ;;  %v1107_v32 = vld [vmem:[#allocation8 + $0x38] sm:$0xff]  ;;  %s768_s9 = sshll.u32 %s1385_s7, 4  ;;  %s769_s9 = int_to_ptr.hbm [resolvable:$true] %s768_s9 }
  0x2d   :  { %v787_v31 = vor.u32 %v1068_v26, %v784_v27  ;;  %v1115_v33 = vld [vmem:[#allocation8 + $0x78] sm:$0xff]  ;;  %v1106_v36 = vld [vmem:[#allocation8 + $0x30] sm:$0xff]  ;;  %v1105_v40 = vld [vmem:[#allocation8 + $0x28] sm:$0xff] }
  0x2e   :  { %309 = vmatpush.bf16.msra.mxu0 %v815_v4  ;;  %v101_v34 = vld [vmem:[#allocation2] sm:$0xf]  ;;  %v1114_v38 = vld [vmem:[#allocation8 + $0x70] sm:$0xff]  ;;  %v1113_v42 = vld [vmem:[#allocation8 + $0x68] sm:$0xff] }
  0x2f   :  { %335 = vmatpush.bf16.msra.mxu2 %v823_v5  ;;  %v1123_v35 = vld [vmem:[#allocation8 + $0xb8] sm:$0xff]  ;;  %v1122_v39 = vld [vmem:[#allocation8 + $0xb0] sm:$0xff]  ;;  %v1121_v43 = vld [vmem:[#allocation8 + $0xa8] sm:$0xff] }
  0x30   :  { %348 = vmatpush.bf16.msra.mxu3 %v827_v6  ;;  %322 = vmatpush.bf16.msra.mxu1 %v819_v10  ;;  %v1131_v37 = vld [vmem:[#allocation8 + $0xf8] sm:$0xff]  ;;  %v1130_v41 = vld [vmem:[#allocation8 + $0xf0] sm:$0xff]  ;;  %v1104_v44 = vld [vmem:[#allocation8 + $0x20] sm:$0xff] }
  0x31   :  { %v1129_v45 = vld [vmem:[#allocation8 + $0xe8] sm:$0xff]  ;;  %v1112_v46 = vld [vmem:[#allocation8 + $0x60] sm:$0xff]  ;;  %v1103_v48 = vld [vmem:[#allocation8 + $0x18] sm:$0xff] }
  0x32   :  { %310 = vmatpush.bf16.msra.mxu0 %v799_v16  ;;  %v1120_v47 = vld [vmem:[#allocation8 + $0xa0] sm:$0xff]  ;;  %v1111_v50 = vld [vmem:[#allocation8 + $0x58] sm:$0xff]  ;;  %v1102_v52 = vld [vmem:[#allocation8 + $0x10] sm:$0xff] }
  0x33   :  { %336 = vmatpush.bf16.msra.mxu2 %v807_v17  ;;  %v1128_v49 = vld [vmem:[#allocation8 + $0xe0] sm:$0xff]  ;;  %v1119_v51 = vld [vmem:[#allocation8 + $0x98] sm:$0xff]  ;;  %v1110_v54 = vld [vmem:[#allocation8 + $0x50] sm:$0xff] }
  0x34   :  { %349 = vmatpush.bf16.msra.mxu3 %v811_v18  ;;  %323 = vmatpush.bf16.msra.mxu1 %v803_v22  ;;  %v1127_v53 = vld [vmem:[#allocation8 + $0xd8] sm:$0xff]  ;;  %v1101_v55 = vld [vmem:[#allocation8 + $0x8] sm:$0xff]  ;;  %v1118_v57 = vld [vmem:[#allocation8 + $0x90] sm:$0xff] }
  0x35   :  { %v1109_v56 = vld [vmem:[#allocation8 + $0x48] sm:$0xff]  ;;  %v1126_v58 = vld [vmem:[#allocation8 + $0xd0] sm:$0xff]  ;;  %v1100_v59 = vld [vmem:[#allocation8] sm:$0xff] }
  0x36   :  { %311 = vmatpush.bf16.msra.mxu0 %v783_v28  ;;  %v1108_v60 = vld [vmem:[#allocation8 + $0x40] sm:$0xff]  ;;  %v1117_v61 = vld [vmem:[#allocation8 + $0x88] sm:$0xff]  ;;  %v1139_v1 = vld [vmem:[#allocation10 + $0x38] sm:$0xff] }
  0x37   :  { %337 = vmatpush.bf16.msra.mxu2 %v791_v29  ;;  %v1125_v62 = vld [vmem:[#allocation8 + $0xc8] sm:$0xff]  ;;  %v1116_v63 = vld [vmem:[#allocation8 + $0x80] sm:$0xff]  ;;  %v1138_v2 = vld [vmem:[#allocation10 + $0x30] sm:$0xff] }
  0x38   :  { %350 = vmatpush.bf16.msra.mxu3 %v795_v30  ;;  %324 = vmatpush.bf16.msra.mxu1 %v787_v31  ;;  %v1124_v0 = vld [vmem:[#allocation8 + $0xc0] sm:$0xff]  ;;  %v1137_v3 = vld [vmem:[#allocation10 + $0x28] sm:$0xff]  ;;  %v134_v4 = vld [vmem:[#allocation7] sm:$0xf] }
  0x39   :  { %312 = vmatmul.bf16.vlgmr.msra.gmra.mxu0 %v101_v34  ;;  %v136_v5 = vperm.slane %v134_v4, 0  ;;  %v137_v6 = vperm.slane %v134_v4, 1  ;;  %v138_v12 = vperm.slane %v134_v4, 2  ;;  %v139_v13 = vperm.slane %v134_v4, 3  ;;  %v1136_v29 = vld [vmem:[#allocation10 + $0x20] sm:$0xff]  ;;  %v1135_v30 = vld [vmem:[#allocation10 + $0x18] sm:$0xff] }
  0x3a   :  { %624 = vmatpush.bf16.msrb.mxu0 %v1107_v32  ;;  %338 = vmatmul.bf16.vlgmr.msra.gmra.mxu2 %v101_v34  ;;  %v1134_v31 = vld [vmem:[#allocation10 + $0x10] sm:$0xff]  ;;  %v1133_v32 = vld [vmem:[#allocation10 + $0x8] sm:$0xff] }
  0x3b   :  { %351 = vmatmul.bf16.vlgmr.msra.gmra.mxu3 %v101_v34  ;;  %325 = vmatmul.bf16.vlgmr.msra.gmra.mxu1 %v101_v34 }
  0x3c   :  { %637 = vmatpush.bf16.msrb.mxu1 %v1115_v33  ;;  %650 = vmatpush.bf16.msrb.mxu2 %v1123_v35  ;;  %v1132_v33 = vld [vmem:[#allocation10] sm:$0xff]  ;;  %v1150_v35 = vld [vmem:[%s1382_s4] ss:$0 sm:$0xff]  ;;  %s1313_s4 = smov [#allocation11]  }
  0x3d   :  { %663 = vmatpush.bf16.msrb.mxu3 %v1131_v37  ;;  %s766_s29 = sshll.u32 %s1313_s4, 4  ;;  %s767_s29 = int_to_ptr.vmem [resolvable:$true] %s766_s29 }
  0x3e   :  { %625 = vmatpush.bf16.msrb.mxu0 %v1106_v36 }
  0x40   :  { %638 = vmatpush.bf16.msrb.mxu1 %v1114_v38  ;;  %651 = vmatpush.bf16.msrb.mxu2 %v1122_v39 }
  0x41   :  { %664 = vmatpush.bf16.msrb.mxu3 %v1130_v41 }
  0x42   :  { %626 = vmatpush.bf16.msrb.mxu0 %v1105_v40 }
  0x44   :  { %639 = vmatpush.bf16.msrb.mxu1 %v1113_v42  ;;  %652 = vmatpush.bf16.msrb.mxu2 %v1121_v43 }
  0x45   :  { %665 = vmatpush.bf16.msrb.mxu3 %v1129_v45 }
  0x46   :  { %627 = vmatpush.bf16.msrb.mxu0 %v1104_v44 }
  0x48   :  { %640 = vmatpush.bf16.msrb.mxu1 %v1112_v46  ;;  %653 = vmatpush.bf16.msrb.mxu2 %v1120_v47 }
  0x49   :  { %666 = vmatpush.bf16.msrb.mxu3 %v1128_v49  ;;  %v1151_v49 = vld [vmem:[%s1384_s6] ss:$0 sm:$0xff] }
  0x4a   :  { %628 = vmatpush.bf16.msrb.mxu0 %v1103_v48 }
  0x4c   :  { %641 = vmatpush.bf16.msrb.mxu1 %v1111_v50  ;;  %654 = vmatpush.bf16.msrb.mxu2 %v1119_v51 }
  0x4d   :  { %667 = vmatpush.bf16.msrb.mxu3 %v1127_v53 }
  0x4e   :  { %629 = vmatpush.bf16.msrb.mxu0 %v1102_v52 }
  0x50   :  { %642 = vmatpush.bf16.msrb.mxu1 %v1110_v54  ;;  %655 = vmatpush.bf16.msrb.mxu2 %v1118_v57 }
  0x51   :  { %668 = vmatpush.bf16.msrb.mxu3 %v1126_v58 }
  0x52   :  { %630 = vmatpush.bf16.msrb.mxu0 %v1101_v55 }
  0x54   :  { %643 = vmatpush.bf16.msrb.mxu1 %v1109_v56  ;;  %656 = vmatpush.bf16.msrb.mxu2 %v1117_v61 }
  0x55   :  { %669 = vmatpush.bf16.msrb.mxu3 %v1125_v62 }
  0x56   :  { %631 = vmatpush.bf16.msrb.mxu0 %v1100_v59 }
  0x58   :  { %644 = vmatpush.bf16.msrb.mxu1 %v1108_v60  ;;  %657 = vmatpush.bf16.msrb.mxu2 %v1116_v63 }
  0x59   :  { %670 = vmatpush.bf16.msrb.mxu3 %v1124_v0 }
  0x5a   :  { %746 = vmatpush.bf16.msra.mxu0 %v1139_v1 }
  0x5e   :  { %747 = vmatpush.bf16.msra.mxu0 %v1138_v2 }
  0x62   :  { %748 = vmatpush.bf16.msra.mxu0 %v1137_v3 }
  0x66   :  { %749 = vmatpush.bf16.msra.mxu0 %v1136_v29 }
  0x6a   :  { %750 = vmatpush.bf16.msra.mxu0 %v1135_v30 }
  0x6e   :  { %751 = vmatpush.bf16.msra.mxu0 %v1134_v31 }
  0x72   :  { %752 = vmatpush.bf16.msra.mxu0 %v1133_v32 }
  0x76   :  { %753 = vmatpush.bf16.msra.mxu0 %v1132_v33 }
  0xb6   :  { %v313_v7 = vpop.f32.mrf.mxu0 }
  0xb7   :  { %v314_v8 = vadd.f32 %v313_v7, %v136_v5 }
  0xb8   :  { %v326_v9 = vpop.f32.mrf.mxu1 }
  0xb9   :  { %v356_v10 = vmax.f32 %v314_v8, 0.0  ;;  %v327_v11 = vadd.f32 %v326_v9, %v137_v6 }
  0xbb   :  { %v360_v14 = vpack.c.bf16 %v356_v10, %v356_v10  ;;  %v357_v15 = vmax.f32 %v327_v11, 0.0 }
  0xbd   :  { %v361_v16 = vpack.c.bf16 %v357_v15, %v357_v15  ;;  %v339_v17 = vpop.f32.mrf.mxu2  ;;  %632 = vmatmul.bf16.vlgmr.msrb.gmra.mxu0 %v360_v14 }
  0xbe   :  { %v352_v18 = vpop.f32.mrf.mxu3  ;;  %v340_v19 = vadd.f32 %v339_v17, %v138_v12  ;;  %v315_v21 = vpop.f32.mrf.mxu0 }
  0xbf   :  { %v353_v20 = vadd.f32 %v352_v18, %v139_v13  ;;  %645 = vmatmul.bf16.vlgmr.msrb.gmra.mxu1 %v361_v16 }
  0xc0   :  { %v358_v22 = vmax.f32 %v340_v19, 0.0  ;;  %v328_v24 = vpop.f32.mrf.mxu1 }
  0xc1   :  { %v359_v23 = vmax.f32 %v353_v20, 0.0 }
  0xc2   :  { %v362_v25 = vpack.c.bf16 %v358_v22, %v358_v22 }
  0xc3   :  { %v363_v26 = vpack.c.bf16 %v359_v23, %v359_v23 }
  0xc4   :  { %658 = vmatmul.bf16.vlgmr.msrb.gmra.mxu2 %v362_v25 }
  0xc5   :  { %671 = vmatmul.bf16.vlgmr.msrb.gmra.mxu3 %v363_v26  ;;  %v341_v27 = vpop.f32.mrf.mxu2 }
  0xc6   :  { %v354_v28 = vpop.f32.mrf.mxu3 }
 0x13a   :  { %v633_v34 = vpop.f32.mrf.mxu0 }
 0x13b   :  { %v634_v37 = vadd.f32 %v1150_v35, %v633_v34 }
 0x13c   :  { %v646_v36 = vpop.f32.mrf.mxu1 }
 0x13d   :  { %v647_v39 = vadd.f32 %v646_v36, %v634_v37 }
 0x142   :  { %v635_v38 = vpop.f32.mrf.mxu0 }
 0x144   :  { %v648_v40 = vpop.f32.mrf.mxu1 }
 0x147   :  { %v659_v41 = vpop.f32.mrf.mxu2 }
 0x148   :  { %v672_v42 = vpop.f32.mrf.mxu3  ;;  %v660_v43 = vadd.f32 %v659_v41, %v647_v39 }
 0x14a   :  { %v673_v44 = vadd.f32 %v672_v42, %v660_v43 }
 0x14c   :  { %v676_v45 = vmax.f32 %v673_v44, 0.0 }
 0x14e   :  { %v677_v46 = vpack.c.bf16 %v676_v45, %v676_v45 }
 0x14f   :  { %v661_v47 = vpop.f32.mrf.mxu2 }
 0x150   :  { %v674_v48 = vpop.f32.mrf.mxu3  ;;  %754 = vmatmul.bf16.vlgmr.msra.gmra.mxu0 %v677_v46 }
 0x1cd   :  { %v755_v50 = vpop.f32.mrf.mxu0 }
 0x1ce   :  { %v756_v51 = vadd.f32 %v1151_v49, %v755_v50 }
 0x1d0   :  { %v759_v52 = vmax.f32 %v756_v51, 0.0 }
 0x1d2   :  { %760 = vst [vmem:[#allocation11] sm:$0xff] %v759_v52 }
 0x1d3   :  { %771 = dma.vmem_to_hbm [thread:$0]  %s767_s29, 128, %s769_s9, [#allocation4]  }
 0x1d5   :  { %v757_v53 = vpop.f32.mrf.mxu0 }
 0x1d6   :  { %1302 = dma.done.wait [#allocation4], 128  }
 0x1d7   :  { %1303 = vsyncadd [#allocation4], 4294967168 }
 0x1d8   :  { %776 = vsyncpa [#allocation3], 1 }
 0x1d9   :  { %777 = vsyncpa [#allocation6], 1 }
 0x1da   :  { %778 = vsyncpa [#allocation9], 1 }
 0x1db   :  { %779 = vsyncpa [#allocation4], 1 }

</bundles_post_ra>
